<compile_context>
chip_gen: v5e
topology: v5e:2x2
jax: 0.10.0
libtpu: 0.0.40
codegen_flags: <defaults>
</compile_context>

<pallas_src>
import functools

import numpy as np
import jax
import jax.numpy as jnp
from jax.experimental import pallas as pl
from jax.experimental.pallas import tpu as pltpu


def _round_up(x, m):
    return (x + m - 1) // m * m


def _cdiv(a, b):
    return -(-a // b)


def _arnet_rlinear_kernel(x_ref, avg_ref, exp_ref, w_ref, o_ref, *, p_lag, n_cont):
    """RevIN standardization + Linear + de-standardization for one batch tile.

    x_ref:   (TB, D)          f32, D = C * p_lag, channel-major layout
    avg_ref: (D, C)           f32, 1/P in continuous channel blocks, 0 elsewhere
    exp_ref: (C, D)           f32, 1 in each channel block (broadcast expansion)
    w_ref:   (D+1+C, F_pad)   f32, [W ; bias_row ; -exp@W]  (augmented Linear weight)
    o_ref:   (TB, F_pad)      f32
    """
    f32 = jnp.float32
    x = x_ref[...]                                                     # (TB, D)
    avg = avg_ref[...]

    # Two reduction matmuls with no serial dependence -> issue back-to-back on the MXU.
    # Categorical columns of `avg` are zero, so categorical channels get mean = E[x^2] = 0.
    mean = jnp.dot(x, avg, preferred_element_type=f32)                 # (TB, C)
    ex2 = jnp.dot(x * x, avg, preferred_element_type=f32)              # (TB, C)

    # One-pass unbiased variance (torch.std default: divide by P-1), clamped vs rounding.
    var = jnp.maximum(ex2 - mean * mean, 0.0) * (p_lag / (p_lag - 1.0))
    std = jnp.sqrt(var)                                                # (TB, C); 0 for cat
    # TODO(synk): approx=True would move this to the EUP slot but loosens the 1e-4 check.
    scale = pl.reciprocal(std + 1.0, approx=False)                     # == 1 for categorical
    ms = mean * scale                                                  # (TB, C)

    # Broadcast scale to each channel's p_lag columns with one small MXU pass (K=C).
    scale_b = jnp.dot(scale, exp_ref[...], preferred_element_type=f32)  # (TB, D)

    # Last continuous channel stats as (TB,1) lane slices (lane-broadcast later; no matmul).
    mean_l = mean[:, n_cont - 1:n_cont]                                # (TB, 1)
    std_l = std[:, n_cont - 1:n_cont]                                  # (TB, 1)
    ones = jnp.ones_like(mean_l)

    # Augmented LHS folds bias + per-channel mean subtraction into the single Linear pass:
    #   y = (x*scale_b) @ W + bias - (mean*scale) @ (exp @ W)  ==  standardized_input @ W + b
    feat_aug = jnp.concatenate([x * scale_b, ones, ms], axis=1)        # (TB, D+1+C)
    y = jnp.dot(feat_aug, w_ref[...], preferred_element_type=f32)      # (TB, F_pad)

    # Reverse instance normalization with the LAST continuous channel's stats
    # (lane-broadcast from a single lane — VPU/XLU, which are idle).
    o_ref[...] = y * (std_l + 1.0) + mean_l


def arnet_rlinear_forward(x_flat, weight_t, bias, *, n_cont, n_cat, p_lag, tile_b=1024):
    """x_flat: (B, D) f32; weight_t: (D, F) f32; bias: (F,) f32 -> (B, F) f32."""
    B, D = x_flat.shape
    F = weight_t.shape[1]
    C = n_cont + n_cat
    assert D == C * p_lag
    assert n_cont >= 1, "RevIN de-standardization needs at least one continuous channel"
    assert p_lag > 1, "unbiased std needs p_lag > 1"

    LANES = 128
    F_pad = _round_up(F, LANES)

    # Balanced batch tiling (no up-to-TB padding waste), >=2 grid steps when B >= 16 so
    # the "parallel" grid axis feeds both TensorCores on v7x.
    n_tiles = max(1, _cdiv(B, tile_b))
    if B >= 16 and n_tiles < 2:
        n_tiles = 2
    TB = _round_up(_cdiv(B, n_tiles), 8)
    B_pad = n_tiles * TB

    # Padded batch rows are zeros -> std=0, scale=1 -> finite outputs; sliced off below.
    x_p = x_flat if B_pad == B else jnp.pad(x_flat, ((0, B_pad - B), (0, 0)))

    # Constant helper matrices (built once on host).
    avg_mat = np.zeros((D, C), np.float32)
    for c in range(n_cont):
        avg_mat[c * p_lag:(c + 1) * p_lag, c] = 1.0 / p_lag
    exp_mat = np.zeros((C, D), np.float32)
    for c in range(C):
        exp_mat[c, c * p_lag:(c + 1) * p_lag] = 1.0
    avg_mat = jnp.asarray(avg_mat)
    exp_mat = jnp.asarray(exp_mat)

    # Augmented, lane-dense Linear weight: rows = [W ; bias ; -exp@W], columns padded to 128.
    w_pad = jnp.pad(weight_t.astype(jnp.float32), ((0, 0), (0, F_pad - F)))
    bias_row = jnp.pad(bias.astype(jnp.float32).reshape(1, F), ((0, 0), (0, F_pad - F)))
    w_exp = exp_mat @ w_pad                                            # (C, F_pad), tiny
    w_aug = jnp.concatenate([w_pad, bias_row, -w_exp], axis=0)         # (D+1+C, F_pad)
    D_aug = D + 1 + C

    kernel = functools.partial(_arnet_rlinear_kernel, p_lag=p_lag, n_cont=n_cont)

    def const(i):  # helper matrices / augmented weight stay VMEM-resident across the grid
        return (0, 0)

    # TODO(synk): for p_lag <= 16 the mean/E[x^2]/scale broadcasts could move to the idle
    # XLU via segmented roll reductions, dropping 3 of the 4 remaining MXU passes.
    out = pl.pallas_call(
        kernel,
        out_shape=jax.ShapeDtypeStruct((B_pad, F_pad), jnp.float32),
        grid=(B_pad // TB,),
        in_specs=[
            pl.BlockSpec((TB, D), lambda i: (i, 0)),
            pl.BlockSpec((D, C), const),
            pl.BlockSpec((C, D), const),
            pl.BlockSpec((D_aug, F_pad), const),
        ],
        out_specs=pl.BlockSpec((TB, F_pad), lambda i: (i, 0)),
        compiler_params=pltpu.CompilerParams(
            dimension_semantics=("parallel",),        # shards the batch grid on v7x's 2 TCs
            vmem_limit_bytes=32 * 1024 * 1024,        # safe on v5e/v6e/v7x
        ),
    )(x_p, avg_mat, exp_mat, w_aug)

    return out[:B, :F]


def _reference_forward(x_flat, weight_t, bias, *, n_cont, n_cat, p_lag):
    """Pure-JAX reference mirroring the PyTorch forward (eval mode, rlinear/univariate)."""
    B, D = x_flat.shape
    C = n_cont + n_cat
    new_input = x_flat.reshape(B, C, p_lag)
    cont = new_input[:, :n_cont, :]
    cat = new_input[:, n_cont:, :]
    mean = jnp.mean(cont, axis=2, keepdims=True)
    std = jnp.sqrt(jnp.sum((cont - mean) ** 2, axis=2, keepdims=True) / (p_lag - 1))
    std_in = (cont - mean) / (std + 1.0)
    full = jnp.concatenate([std_in, cat], axis=1).reshape(B, D)
    y = full @ weight_t + bias
    rev_mean = mean[:, n_cont - 1, :]
    rev_std = std[:, n_cont - 1, :]
    return y * (rev_std + 1.0) + rev_mean


if __name__ == "__main__":
    # Small, forward-consistent shapes (ARNet defaults: batch_size=8).
    batch_size = 8
    p_lag = 8
    n_cont = 4
    n_cat = 2
    future_steps = 8           # univariate -> inflation_factor = 1
    C = n_cont + n_cat
    D = C * p_lag
    F = future_steps

    key = jax.random.PRNGKey(0)
    kx, kw, kb = jax.random.split(key, 3)

    # Input, as if torch tensor of shape (batch, C*p_lag) fed to forward().
    x = jax.random.normal(kx, (batch_size, D), dtype=jnp.float32)

    # nn.Linear(D, F) init: U(-1/sqrt(D), 1/sqrt(D)); store weight transposed (D, F).
    bound = 1.0 / (D ** 0.5)
    weight_t = jax.random.uniform(kw, (D, F), jnp.float32, -bound, bound)
    bias = jax.random.uniform(kb, (F,), jnp.float32, -bound, bound)

    # TODO(synk): dropout(p=0.2) is identity here (eval mode); training-mode dropout would
    # use pltpu.prng_seed / prng_random_bits inside the kernel.
    # TODO(synk): bf16 MXU issue for the Linear would halve LHS traffic but loosens the
    # 1e-4 check vs the f32 reference, so all dots stay f32 here.

    out = arnet_rlinear_forward(
        x, weight_t, bias, n_cont=n_cont, n_cat=n_cat, p_lag=p_lag
    )
    out = jax.block_until_ready(out)

    ref = _reference_forward(
        x, weight_t, bias, n_cont=n_cont, n_cat=n_cat, p_lag=p_lag
    )
    assert out.shape == (batch_size, future_steps)
    assert jnp.allclose(out, ref, atol=1e-4, rtol=1e-4), "mismatch vs reference"

    print("KERNEL_OK")
</pallas_src>

<mosaic_0001>
module attributes {stable_mosaic.version = 11 : i64} {
  func.func @_arnet_rlinear_kernel(%arg0: i32, %arg1: memref<8x48xf32, #tpu.memory_space<vmem>>, %arg2: memref<48x6xf32, #tpu.memory_space<vmem>>, %arg3: memref<6x48xf32, #tpu.memory_space<vmem>>, %arg4: memref<55x128xf32, #tpu.memory_space<vmem>>, %arg5: memref<8x128xf32, #tpu.memory_space<vmem>>) attributes {dimension_semantics = [#tpu.dimension_semantics<parallel>], iteration_bounds = array<i64: 1>, scalar_prefetch = 0 : i64, scratch_operands = 0 : i64, tpu.core_type = #tpu.core_type<tc>, window_params = [{transform_indices = @transform_0, window_bounds = array<i64: 8, 48>}, {pipeline_mode = #tpu.pipeline_mode<synchronous>, transform_indices = @transform_1, window_bounds = array<i64: 48, 6>}, {pipeline_mode = #tpu.pipeline_mode<synchronous>, transform_indices = @transform_2, window_bounds = array<i64: 6, 48>}, {pipeline_mode = #tpu.pipeline_mode<synchronous>, transform_indices = @transform_3, window_bounds = array<i64: 55, 128>}, {transform_indices = @transform_4, window_bounds = array<i64: 8, 128>}]} {
    %c0 = arith.constant 0 : index
    %c0_0 = arith.constant 0 : index
    %0 = vector.load %arg1[%c0, %c0_0] : memref<8x48xf32, #tpu.memory_space<vmem>>, vector<8x48xf32>
    %c0_1 = arith.constant 0 : index
    %c0_2 = arith.constant 0 : index
    %1 = vector.load %arg2[%c0_1, %c0_2] : memref<48x6xf32, #tpu.memory_space<vmem>>, vector<48x6xf32>
    %cst = arith.constant dense<0.000000e+00> : vector<8x6xf32>
    %2 = tpu.matmul %0, %1, %cst {dimension_numbers = #tpu.dot_dimension_numbers<[1], [0], [0], [1], [0, 0, 1, 1], [], []>} : vector<8x48xf32>, vector<48x6xf32>, vector<8x6xf32> -> vector<8x6xf32>
    %3 = arith.mulf %0, %0 : vector<8x48xf32>
    %cst_3 = arith.constant dense<0.000000e+00> : vector<8x6xf32>
    %4 = tpu.matmul %3, %1, %cst_3 {dimension_numbers = #tpu.dot_dimension_numbers<[1], [0], [0], [1], [0, 0, 1, 1], [], []>} : vector<8x48xf32>, vector<48x6xf32>, vector<8x6xf32> -> vector<8x6xf32>
    %5 = arith.mulf %2, %2 : vector<8x6xf32>
    %6 = arith.subf %4, %5 : vector<8x6xf32>
    %cst_4 = arith.constant 0.000000e+00 : f32
    %7 = vector.broadcast %cst_4 : f32 to vector<8x6xf32>
    %8 = arith.maximumf %6, %7 : vector<8x6xf32>
    %cst_5 = arith.constant 1.14285719 : f32
    %9 = vector.broadcast %cst_5 : f32 to vector<8x6xf32>
    %10 = arith.mulf %8, %9 : vector<8x6xf32>
    %11 = math.sqrt %10 : vector<8x6xf32>
    %cst_6 = arith.constant 1.000000e+00 : f32
    %12 = vector.broadcast %cst_6 : f32 to vector<8x6xf32>
    %13 = arith.addf %11, %12 : vector<8x6xf32>
    %14 = tpu.reciprocal %13 : vector<8x6xf32> -> vector<8x6xf32>
    %15 = arith.mulf %2, %14 : vector<8x6xf32>
    %c0_7 = arith.constant 0 : index
    %c0_8 = arith.constant 0 : index
    %16 = vector.load %arg3[%c0_7, %c0_8] : memref<6x48xf32, #tpu.memory_space<vmem>>, vector<6x48xf32>
    %cst_9 = arith.constant dense<0.000000e+00> : vector<8x48xf32>
    %17 = tpu.matmul %14, %16, %cst_9 {dimension_numbers = #tpu.dot_dimension_numbers<[1], [0], [0], [1], [0, 0, 1, 1], [], []>} : vector<8x6xf32>, vector<6x48xf32>, vector<8x48xf32> -> vector<8x48xf32>
    %18 = vector.extract_strided_slice %2 {offsets = [0, 3], sizes = [8, 1], strides = [1, 1]} : vector<8x6xf32> to vector<8x1xf32>
    %19 = vector.extract_strided_slice %11 {offsets = [0, 3], sizes = [8, 1], strides = [1, 1]} : vector<8x6xf32> to vector<8x1xf32>
    %cst_10 = arith.constant 1.000000e+00 : f32
    %20 = vector.broadcast %cst_10 : f32 to vector<8x1xf32>
    %21 = arith.mulf %0, %17 : vector<8x48xf32>
    %22 = tpu.concatenate %21, %20, %15 in 1 : vector<8x48xf32>, vector<8x1xf32>, vector<8x6xf32> -> vector<8x55xf32>
    %c0_11 = arith.constant 0 : index
    %c0_12 = arith.constant 0 : index
    %23 = vector.load %arg4[%c0_11, %c0_12] : memref<55x128xf32, #tpu.memory_space<vmem>>, vector<55x128xf32>
    %cst_13 = arith.constant dense<0.000000e+00> : vector<8x128xf32>
    %24 = tpu.matmul %22, %23, %cst_13 {dimension_numbers = #tpu.dot_dimension_numbers<[1], [0], [0], [1], [0, 0, 1, 1], [], []>} : vector<8x55xf32>, vector<55x128xf32>, vector<8x128xf32> -> vector<8x128xf32>
    %cst_14 = arith.constant 1.000000e+00 : f32
    %25 = vector.broadcast %cst_14 : f32 to vector<8x1xf32>
    %26 = arith.addf %19, %25 : vector<8x1xf32>
    %27 = vector.broadcast %26 : vector<8x1xf32> to vector<8x128xf32>
    %28 = arith.mulf %24, %27 : vector<8x128xf32>
    %29 = vector.broadcast %18 : vector<8x1xf32> to vector<8x128xf32>
    %30 = arith.addf %28, %29 : vector<8x128xf32>
    %c0_15 = arith.constant 0 : index
    %c0_16 = arith.constant 0 : index
    %31 = vector.load %arg5[%c0_15, %c0_16] : memref<8x128xf32, #tpu.memory_space<vmem>>, vector<8x128xf32>
    tpu.vector_store %arg5[%c0_15, %c0_16], %30 {strides = array<i32>} : memref<8x128xf32, #tpu.memory_space<vmem>>, vector<8x128xf32>,
    return
  }
  func.func @transform_0(%arg0: i32) -> (i32, i32) {
    %c0_i32 = arith.constant 0 : i32
    %c0_i32_0 = arith.constant 0 : i32
    return %arg0, %c0_i32 : i32, i32
  }
  func.func @transform_1(%arg0: i32) -> (i32, i32) {
    %c0_i32 = arith.constant 0 : i32
    %c0_i32_0 = arith.constant 0 : i32
    %c0_i32_1 = arith.constant 0 : i32
    return %c0_i32, %c0_i32_0 : i32, i32
  }
  func.func @transform_2(%arg0: i32) -> (i32, i32) {
    %c0_i32 = arith.constant 0 : i32
    %c0_i32_0 = arith.constant 0 : i32
    %c0_i32_1 = arith.constant 0 : i32
    return %c0_i32, %c0_i32_0 : i32, i32
  }
  func.func @transform_3(%arg0: i32) -> (i32, i32) {
    %c0_i32 = arith.constant 0 : i32
    %c0_i32_0 = arith.constant 0 : i32
    %c0_i32_1 = arith.constant 0 : i32
    return %c0_i32, %c0_i32_0 : i32, i32
  }
  func.func @transform_4(%arg0: i32) -> (i32, i32) {
    %c0_i32 = arith.constant 0 : i32
    %c0_i32_0 = arith.constant 0 : i32
    return %arg0, %c0_i32 : i32, i32
  }
}

</mosaic_0001>

<bundles_post_ra>
// kernel: tpu_custom_call.1
= control target key start
LH: loop header
LB: loop body
LE: loop exit
PB: predicated region body
PF: predicated region fallthrough
CT: control target
= control target key end

     0   :  { %9 = vsyncpa [#allocation3], 0  ;;  %s418_s0 = inlined_call_operand.hbm [shape: f32[8,48], index: 0, kind: input, shape index: {}]   ;;  %s419_s1 = inlined_call_operand.vmem [shape: f32[48,6], index: 1, kind: input, shape index: {}]   ;;  %s420_s2 = inlined_call_operand.hbm [shape: f32[6,48], index: 2, kind: input, shape index: {}]   ;;  %s421_s3 = inlined_call_operand.vmem [shape: f32[55,128], index: 3, kind: input, shape index: {}]   ;;  %s422_s4 = inlined_call_operand.hbm [shape: f32[8,128], index: 4, kind: output, shape index: {}]  }
   0x1   :  { %10 = vsyncpa [#allocation6], 0 }
   0x2   :  { %11 = vsyncpa [#allocation4], 0  ;;  %s17_s17 = sshll.u32 %s418_s0, 4  ;;  %s331_s18 = smov [#allocation2]   ;;  %s18_s17 = int_to_ptr.hbm [resolvable:$true] %s17_s17 }
   0x3   :  { %s19_s19 = sshll.u32 %s331_s18, 4  ;;  %s30_s22 = sshll.u32 %s420_s2, 4  ;;  %s20_s19 = int_to_ptr.vmem [resolvable:$true] %s19_s19  ;;  %s31_s22 = int_to_ptr.hbm [resolvable:$true] %s30_s22 }
   0x4   :  { %22 = dma.hbm_to_vmem [thread:$0]  %s18_s17, 128, %s20_s19, [#allocation3]  }
   0x5   :  { %s332_s23 = smov [#allocation5]  }
   0x6   :  { %s32_s24 = sshll.u32 %s332_s23, 4  ;;  %s33_s24 = int_to_ptr.vmem [resolvable:$true] %s32_s24 }
   0x7   :  { %35 = dma.hbm_to_vmem [thread:$0]  %s31_s22, 128, %s33_s24, [#allocation6]  }
   0x8   :  { %325 = dma.done.wait [#allocation3], 128  }
   0x9   :  { %326 = vsyncadd [#allocation3], 4294967168 }
   0xa   :  { %327 = dma.done.wait [#allocation6], 128  }
   0xb   :  { %328 = vsyncadd [#allocation6], 4294967168  ;;  %v333_v0 = vmov 3   ;;  %v52_v1 = vld [vmem:[%s419_s1 + $0x28] sm:$0xff]  ;;  %v51_v2 = vld [vmem:[%s419_s1 + $0x20] sm:$0xff]  ;;  %vm53_vm0 = vcmask 392192  }
   0xc   :  { %248 = vset.pattern.permute.xlu1 %v333_v0  ;;  %247 = vset.pattern.permute.xlu0 %v333_v0  ;;  %v50_v3 = vld [vmem:[%s419_s1 + $0x18] sm:$0xff]  ;;  %v49_v4 = vld [vmem:[%s419_s1 + $0x10] sm:$0xff]  ;;  %v379_v5 = vld [vmem:[#allocation2] sm:$0xff]  ;;  %vm138_vm1 = vcmask 1045504   ;;  %vm134_vm7 = vcmask 48128   ;;  %vm181_vm9 = vcmask 1046528  }
   0xd   :  { %67 = vmatpush.msra.mxu0 %v52_v1  ;;  %91 = vmatpush.msra.mxu1 %v52_v1  ;;  %v48_v6 = vld [vmem:[%s419_s1 + $0x8] sm:$0xff]  ;;  %v47_v7 = vld [vmem:[%s419_s1] sm:$0xff]  ;;  %v77_v8 = vmul.f32 %v379_v5, %v379_v5  ;;  %s334_s1 = smov 49   ;;  %v176_v38 = vld [vmem:[%s421_s3 + $0x30] sm:$0x7f]  ;;  %vm168_vm10 = vcmask 400384  }
   0xe   :  { %v133_v9 = vld [vmem:[#allocation5] sm:$0x3f]  ;;  %240 = vmatpush.msk.msra.mxu3 %vm181_vm9, %v176_v38  ;;  %v174_v40 = vld [vmem:[%s421_s3 + $0x20] sm:$0xff]  ;;  %v173_v41 = vld [vmem:[%s421_s3 + $0x18] sm:$0xff]  ;;  %vm177_vm11 = vcmask 449536   ;;  %s335_s23 = smov [#allocation7]  }
   0xf   :  { %68 = vmatpush.msra.mxu0 %v51_v2  ;;  %92 = vmatpush.msra.mxu1 %v51_v2  ;;  %v175_v39 = vld [vmem:[%s421_s3 + $0x28] sm:$0xff]  ;;  %v172_v42 = vld [vmem:[%s421_s3 + $0x10] sm:$0xff]  ;;  %v170_v44 = vld [vmem:[%s421_s3] sm:$0xff]  ;;  %s223_s24 = sshll.u32 %s335_s23, 4  ;;  %s225_s26 = sshll.u32 %s422_s4, 4  ;;  %s224_s24 = int_to_ptr.vmem [resolvable:$true] %s223_s24  ;;  %s226_s26 = int_to_ptr.hbm [resolvable:$true] %s225_s26 }
  0x10   :  { %238 = vmatpush.msk.msra.mxu2 %vm138_vm1, %v133_v9  ;;  %195 = vmatpush.msra.mxu3 %v175_v39  ;;  %v171_v43 = vld [vmem:[%s421_s3 + $0x8] sm:$0xff] }
  0x11   :  { %69 = vmatpush.msra.mxu0 %v50_v3  ;;  %93 = vmatpush.msra.mxu1 %v50_v3 }
  0x12   :  { %196 = vmatpush.msra.mxu3 %v174_v40 }
  0x13   :  { %70 = vmatpush.msra.mxu0 %v49_v4  ;;  %94 = vmatpush.msra.mxu1 %v49_v4 }
  0x14   :  { %197 = vmatpush.msra.mxu3 %v173_v41 }
  0x15   :  { %71 = vmatpush.msra.mxu0 %v48_v6  ;;  %95 = vmatpush.msra.mxu1 %v48_v6 }
  0x16   :  { %198 = vmatpush.msra.mxu3 %v172_v42 }
  0x17   :  { %72 = vmatpush.msra.mxu0 %v47_v7  ;;  %96 = vmatpush.msra.mxu1 %v47_v7 }
  0x18   :  { %236 = vmatmul.msk.f32.vlgmr.msra.gmra.mxu0 %vm53_vm0, %v379_v5  ;;  %237 = vmatmul.msk.f32.vlgmr.msra.gmra.mxu1 %vm53_vm0, %v77_v8 }
  0x19   :  { %199 = vmatpush.msra.mxu3 %v171_v43 }
  0x1b   :  { %200 = vmatpush.msra.mxu3 %v170_v44 }
  0x95   :  { %v74_v10 = vpop.f32.mrf.mxu0  ;;  %v98_v11 = vpop.f32.mrf.mxu1 }
  0x96   :  { %v101_v12 = vmul.f32 %v74_v10, %v74_v10  ;;  %213 = vperm.xlu1 %248, %v74_v10  }
  0x98   :  { %v102_v13 = vsub.f32 %v98_v11, %v101_v12 }
  0x9a   :  { %v103_v14 = vmax.f32 %v102_v13, 0.0 }
  0x9c   :  { %v104_v15 = vmul.f32 1.1428572, %v103_v14 }
  0x9e   :  { %249 = vrsqrt.f32 %v104_v15  ;;  %vm112_vm2 = vcmp.eq.f32.partialorder %v104_v15, inf  ;;  %v115_v23 = vand.u32 2147483648, %v104_v15  ;;  %vm114_vm3 = vcmp.eq.f32.partialorder %v104_v15, 0.0 }
  0xa4   :  { %v250_v16 = vpop.eup %249 }
  0xa5   :  { %v106_v17 = vmul.f32 %v250_v16, %v104_v15 }
  0xa7   :  { %v107_v18 = vmul.f32 %v250_v16, %v106_v17 }
  0xa9   :  { %v108_v19 = vmul.f32 0.5, %v107_v18 }
  0xab   :  { %v109_v20 = vsub.f32 1.5, %v108_v19 }
  0xad   :  { %v110_v21 = vmul.f32 %v250_v16, %v109_v20 }
  0xaf   :  { %v111_v22 = vmul.f32 %v110_v21, %v104_v15 }
  0xb1   :  { %v113_v24 = vsel %vm112_vm2, %v104_v15, %v111_v22 }
  0xb2   :  { %v116_v25 = vsel %vm114_vm3, %v115_v23, %v113_v24 }
  0xb3   :  { %v117_v26 = vadd.f32 1.0, %v116_v25 }
  0xb5   :  { %251 = vrcp.f32 %v117_v26  ;;  %v129_v30 = vand.u32 2147483648, %v117_v26  ;;  %v127_v32 = vand.u32 2147483647, %v117_v26  ;;  %vm123_vm5 = vweird.f32 %v117_v26 }
  0xb7   :  { %v130_v34 = vor.u32 1.1754944e-38, %v129_v30  ;;  %vm128_vm8 = vcmp.eq.f32.partialorder %v127_v32, 8.507059e+37 }
  0xbb   :  { %v252_v27 = vpop.eup %251 }
  0xbc   :  { %v119_v28 = vmul.f32 %v252_v27, %v117_v26  ;;  %vm124_vm4 = vweird.f32 %v252_v27 }
  0xbd   :  { %vm125_vm6 = vmor %vm123_vm5, %vm124_vm4 }
  0xbe   :  { %v120_v29 = vsub.f32 1.0, %v119_v28 }
  0xc0   :  { %v121_v31 = vmul.f32 %v252_v27, %v120_v29 }
  0xc2   :  { %v122_v33 = vadd.f32 %v252_v27, %v121_v31 }
  0xc4   :  { %v126_v35 = vsel %vm125_vm6, %v252_v27, %v122_v33 }
  0xc5   :  { %v131_v36 = vsel %vm128_vm8, %v130_v34, %v126_v35 }
  0xc6   :  { %239 = vmatmul.msk.f32.vlgmr.msra.gmra.mxu2 %vm134_vm7, %v131_v36  ;;  %v132_v37 = vmul.f32 %v131_v36, %v74_v10 }
  0xc8   :  { %164 = vrot.lane.b32.xlu0 %v132_v37, %s334_s1 }
  0xd0   :  { %207 = vperm.xlu0 %247, %v117_v26  }
 0x108   :  { %v214_v53 = vpop.permute.xlu1 %213 }
 0x13a   :  { %v165_v47 = vpop.permute.xlu0 %164 }
 0x142   :  { %v208_v50 = vpop.permute.xlu0 %207 }
 0x149   :  { %v159_v45 = vpop.f32.mrf.mxu2 }
 0x14a   :  { %v162_v46 = vmul.f32 %v159_v45, %v379_v5 }
 0x14c   :  { %v167_v48 = vsel %vm53_vm0, %v162_v46, 1.0 }
 0x14d   :  { %v169_v49 = vsel %vm168_vm10, %v167_v48, %v165_v47 }
 0x14e   :  { %241 = vmatmul.msk.f32.vlgmr.msra.gmra.mxu3 %vm177_vm11, %v169_v49 }
 0x1d1   :  { %v202_v51 = vpop.f32.mrf.mxu3 }
 0x1d2   :  { %v210_v52 = vmul.f32 %v208_v50, %v202_v51 }
 0x1d4   :  { %v216_v54 = vadd.f32 %v214_v53, %v210_v52 }
 0x1d6   :  { %217 = vst [vmem:[#allocation7] sm:$0xff] %v216_v54 }
 0x1d7   :  { %228 = dma.vmem_to_hbm [thread:$0]  %s224_s24, 128, %s226_s26, [#allocation4]  }
 0x1d8   :  { %329 = dma.done.wait [#allocation4], 128  }
 0x1d9   :  { %330 = vsyncadd [#allocation4], 4294967168 }
 0x1da   :  { %233 = vsyncpa [#allocation3], 1 }
 0x1db   :  { %234 = vsyncpa [#allocation6], 1 }
 0x1dc   :  { %235 = vsyncpa [#allocation4], 1 }

</bundles_post_ra>
